<compile_context>
chip_gen: v7x
topology: tpu7x:2x2x1
jax: 0.10.0
libtpu: 0.0.40
codegen_flags: <defaults>
</compile_context>

<pallas_src>
import functools

import jax
import jax.numpy as jnp
from jax.experimental import pallas as pl
from jax.experimental.pallas import tpu as pltpu


# ----------------------------------------------------------------------------
# Pallas kernels: fused input projection + serial LSTM recurrence.
# ----------------------------------------------------------------------------
def _lstm_recurrence(x_ref, wih_ref, whh_ref, bias_ref):
    """Fused input projection + unrolled LSTM recurrence.

    x_ref:    (B, T, F)  float32   batch-first input sequence
    wih_ref:  (F, 4H)    float32   W_ih^T
    whh_ref:  (H, 4H)    bfloat16  W_hh^T (MXU-native operand dtype)
    bias_ref: (1, 4H)    float32   b_ih + b_hh
    returns:  (B, H)     float32   final hidden state
    """
    B, T, F = x_ref.shape
    H = whh_ref.shape[0]
    wih = wih_ref[...]
    whh = whh_ref[...]
    # Hoisted once (broadcast_in_dim is not CSE'd by JAX; don't redo per t).
    bias = jnp.broadcast_to(bias_ref[...], (B, 4 * H))

    # ---- Preamble: gx_t = x_t @ W_ih^T + bias for every t. -----------------
    # Independent of the recurrence -> the scheduler can issue these ahead of
    # / interleaved with the serial t-chain.  F is tiny, so F broadcast
    # mul-adds beat a degenerate depth-F MXU matmul.
    gx = []
    for t in range(T):
        x_t = x_ref[:, t, :]                               # (B, F)
        g_t = bias
        for fidx in range(F):
            g_t = g_t + x_t[:, fidx:fidx + 1] * wih[fidx:fidx + 1, :]
        gx.append(g_t)

    # ---- Serial recurrence (the latency-bound chain). ----------------------
    h = jnp.zeros((B, H), jnp.float32)
    c = jnp.zeros((B, H), jnp.float32)
    for t in range(T):
        gates = gx[t]
        if t > 0:
            # h_0 == 0, so the recurrent matmul is elided at step 0.
            # bf16 x bf16 -> f32 accumulate on the MXU.
            gates = gates + jnp.dot(h.astype(jnp.bfloat16), whh,
                                    preferred_element_type=jnp.float32)
        # One sigmoid + one tanh over the full 4H-wide gate tensor
        # (2 EUP passes per step); slice the gates afterwards.
        # PyTorch gate order: i, f, g, o.
        sig = jax.nn.sigmoid(gates)
        th = jnp.tanh(gates)
        i = sig[:, 0:H]
        f_ = sig[:, H:2 * H]
        o = sig[:, 3 * H:4 * H]
        g = th[:, 2 * H:3 * H]
        c = i * g if t == 0 else f_ * c + i * g
        h = o * jnp.tanh(c)
    return h


def _lstm_kernel(x_ref, wih_ref, whh_ref, bias_ref, h_ref):
    h_ref[...] = _lstm_recurrence(x_ref, wih_ref, whh_ref, bias_ref)


def _lstm_concat_kernel(x_ref, wih_ref, whh_ref, bias_ref, feat_ref,
                        ext_ref, h_ref):
    h = _lstm_recurrence(x_ref, wih_ref, whh_ref, bias_ref)
    h_ref[...] = h
    # Single full-width store of [h | handcrafted features] (one vst instead
    # of two masked partial stores into the same padded lane tile).
    ext_ref[...] = jnp.concatenate([h, feat_ref[...]], axis=-1)


_VMEM = pl.BlockSpec(memory_space=pltpu.MemorySpace.VMEM)


@functools.partial(jax.jit, static_argnames=("use_handcraft",))
def _feature_extractor_fwd(x_btf, feat_b, wih_t, whh_bf16, bias_row,
                           use_handcraft):
    """x_btf: (B, T, F); feat_b: (B, n_hf). Returns (extract_states, lstm_out)."""
    B, T, _ = x_btf.shape
    H = whh_bf16.shape[0]
    x32 = x_btf.astype(jnp.float32)

    if use_handcraft == 1:
        n_hf = feat_b.shape[1]
        ext, h = pl.pallas_call(
            _lstm_concat_kernel,
            out_shape=(
                jax.ShapeDtypeStruct((B, H + n_hf), jnp.float32),
                jax.ShapeDtypeStruct((B, H), jnp.float32),
            ),
            in_specs=[_VMEM] * 5,
            out_specs=(_VMEM, _VMEM),
        )(x32, wih_t, whh_bf16, bias_row, feat_b.astype(jnp.float32))
        return ext, h
    else:
        h = pl.pallas_call(
            _lstm_kernel,
            out_shape=jax.ShapeDtypeStruct((B, H), jnp.float32),
            in_specs=[_VMEM] * 4,
            out_specs=_VMEM,
        )(x32, wih_t, whh_bf16, bias_row)
        return h, h


# ----------------------------------------------------------------------------
# FeatureExtractor wrapper (glue: layout, squeeze/flatten, mode handling).
# ----------------------------------------------------------------------------
class FeatureExtractorPallas:
    def __init__(self, n_features, n_hidden, n_handcrafted_features,
                 use_handcraft, key):
        self.n_features = n_features
        self.n_hidden = n_hidden
        self.n_handcrafted_features = n_handcrafted_features
        self.use_handcraft = use_handcraft

        # PyTorch LSTM default init: U(-1/sqrt(H), 1/sqrt(H)) for all params.
        k = 1.0 / jnp.sqrt(jnp.float32(n_hidden))
        k0, k1, k2, k3 = jax.random.split(key, 4)
        self.w_ih = jax.random.uniform(k0, (4 * n_hidden, n_features),
                                       jnp.float32, -k, k)
        self.w_hh = jax.random.uniform(k1, (4 * n_hidden, n_hidden),
                                       jnp.float32, -k, k)
        self.b_ih = jax.random.uniform(k2, (4 * n_hidden,), jnp.float32, -k, k)
        self.b_hh = jax.random.uniform(k3, (4 * n_hidden,), jnp.float32, -k, k)

        # Kernel-ready forms, computed once (not per call).
        self.wih_t = jnp.transpose(self.w_ih)                      # (F, 4H) f32
        self.whh_bf16 = jnp.transpose(self.w_hh).astype(jnp.bfloat16)  # (H, 4H)
        self.bias_row = (self.b_ih + self.b_hh).reshape(1, -1)     # (1, 4H) f32

    def __call__(self, s, feat, mode):
        if mode == 'batch':
            # s: (B, T, F), feat: (B, 1, n_hf)
            feat2 = feat[:, 0, :]                                  # squeeze(1)
            extract_states, lstm_output = _feature_extractor_fwd(
                s, feat2, self.wih_t, self.whh_bf16, self.bias_row,
                self.use_handcraft)
            return extract_states, lstm_output
        else:
            # s: (T, F), feat: (n_hf,)
            x = s[None, :, :]                                      # (1, T, F)
            feat2 = jnp.reshape(feat, (1, -1))
            ext, h = _feature_extractor_fwd(
                x, feat2, self.wih_t, self.whh_bf16, self.bias_row,
                self.use_handcraft)
            return ext.reshape(-1), h.reshape(-1)                  # flatten


# ----------------------------------------------------------------------------
# Pure-JAX (f32) reference for a correctness check.
# ----------------------------------------------------------------------------
def _lstm_ref(x_btf, w_ih, w_hh, b_ih, b_hh):
    B, T, _ = x_btf.shape
    H = w_hh.shape[1]
    h = jnp.zeros((B, H), jnp.float32)
    c = jnp.zeros((B, H), jnp.float32)
    for t in range(T):
        gates = x_btf[:, t, :] @ w_ih.T + h @ w_hh.T + b_ih + b_hh
        i = jax.nn.sigmoid(gates[:, 0:H])
        f = jax.nn.sigmoid(gates[:, H:2 * H])
        g = jnp.tanh(gates[:, 2 * H:3 * H])
        o = jax.nn.sigmoid(gates[:, 3 * H:4 * H])
        c = f * c + i * g
        h = o * jnp.tanh(c)
    return h


if __name__ == "__main__":
    # Small shapes consistent with the module's args.
    B, T = 2, 8                       # batch, sequence length
    n_features = 2                    # e.g. (glucose, insulin)
    n_hidden = 32
    n_handcrafted_features = 1
    use_handcraft = 1

    key = jax.random.PRNGKey(0)
    k_param, k_s, k_f = jax.random.split(key, 3)

    model = FeatureExtractorPallas(n_features, n_hidden,
                                   n_handcrafted_features, use_handcraft,
                                   k_param)

    s = jax.random.normal(k_s, (B, T, n_features), jnp.float32)
    feat = jax.random.normal(k_f, (B, 1, n_handcrafted_features), jnp.float32)

    # bf16 recurrent-matmul operands -> tolerance vs. the f32 reference.
    ATOL = 2e-2
    RTOL = 2e-2

    # ---- batch mode ---------------------------------------------------------
    extract_states, lstm_output = model(s, feat, mode='batch')
    extract_states = jax.block_until_ready(extract_states)
    lstm_output = jax.block_until_ready(lstm_output)

    assert extract_states.shape == (B, n_hidden + n_handcrafted_features)
    assert lstm_output.shape == (B, n_hidden)

    ref_h = _lstm_ref(s, model.w_ih, model.w_hh, model.b_ih, model.b_hh)
    assert jnp.allclose(lstm_output, ref_h, atol=ATOL, rtol=RTOL), \
        "Pallas LSTM mismatch vs reference (batch mode)"
    ref_extract = jnp.concatenate([ref_h, feat[:, 0, :]], axis=1)
    assert jnp.allclose(extract_states, ref_extract, atol=ATOL, rtol=RTOL), \
        "Pallas extract_states mismatch vs reference (batch mode)"

    # ---- single (non-batch) mode -------------------------------------------
    s1 = s[0]                                   # (T, F)
    f1 = feat[0, 0, :]                          # (n_hf,)
    ext1, h1 = model(s1, f1, mode='single')
    ext1 = jax.block_until_ready(ext1)
    h1 = jax.block_until_ready(h1)

    assert ext1.shape == (n_hidden + n_handcrafted_features,)
    assert h1.shape == (n_hidden,)

    ref_h1 = _lstm_ref(s1[None], model.w_ih, model.w_hh,
                       model.b_ih, model.b_hh)[0]
    assert jnp.allclose(h1, ref_h1, atol=ATOL, rtol=RTOL), \
        "Pallas LSTM mismatch vs reference (single mode)"
    assert jnp.allclose(ext1, jnp.concatenate([ref_h1, f1], axis=0),
                        atol=ATOL, rtol=RTOL), \
        "Pallas extract_states mismatch vs reference (single mode)"

    print("KERNEL_OK")
</pallas_src>

<mosaic_0001>
module attributes {stable_mosaic.version = 11 : i64} {
  func.func @_lstm_concat_kernel(%arg0: memref<2x8x2xf32, #tpu.memory_space<vmem>>, %arg1: memref<2x128xf32, #tpu.memory_space<vmem>>, %arg2: memref<32x128xbf16, #tpu.memory_space<vmem>>, %arg3: memref<1x128xf32, #tpu.memory_space<vmem>>, %arg4: memref<2x1xf32, #tpu.memory_space<vmem>>, %arg5: memref<2x33xf32, #tpu.memory_space<vmem>>, %arg6: memref<2x32xf32, #tpu.memory_space<vmem>>) attributes {dimension_semantics = [], scalar_prefetch = 0 : i64, scratch_operands = 0 : i64, tpu.core_type = #tpu.core_type<tc>} {
    %c0 = arith.constant 0 : index
    %c0_0 = arith.constant 0 : index
    %0 = vector.load %arg1[%c0, %c0_0] : memref<2x128xf32, #tpu.memory_space<vmem>>, vector<2x128xf32>
    %c0_1 = arith.constant 0 : index
    %c0_2 = arith.constant 0 : index
    %1 = vector.load %arg2[%c0_1, %c0_2] : memref<32x128xbf16, #tpu.memory_space<vmem>>, vector<32x128xbf16>
    %c0_3 = arith.constant 0 : index
    %c0_4 = arith.constant 0 : index
    %2 = vector.load %arg3[%c0_3, %c0_4] : memref<1x128xf32, #tpu.memory_space<vmem>>, vector<1x128xf32>
    %3 = vector.shape_cast %2 : vector<1x128xf32> to vector<1x128xf32>
    %4 = vector.broadcast %3 : vector<1x128xf32> to vector<2x128xf32>
    %c0_5 = arith.constant 0 : index
    %c0_6 = arith.constant 0 : index
    %c0_7 = arith.constant 0 : index
    %5 = vector.load %arg0[%c0_5, %c0_6, %c0_7] : memref<2x8x2xf32, #tpu.memory_space<vmem>>, vector<2x1x2xf32>
    %6 = vector.shape_cast %5 : vector<2x1x2xf32> to vector<2x2xf32>
    %7 = vector.extract_strided_slice %6 {offsets = [0, 0], sizes = [2, 1], strides = [1, 1]} : vector<2x2xf32> to vector<2x1xf32>
    %8 = vector.extract_strided_slice %0 {offsets = [0, 0], sizes = [1, 128], strides = [1, 1]} : vector<2x128xf32> to vector<1x128xf32>
    %9 = vector.broadcast %7 : vector<2x1xf32> to vector<2x128xf32>
    %10 = vector.broadcast %8 : vector<1x128xf32> to vector<2x128xf32>
    %11 = arith.mulf %9, %10 : vector<2x128xf32>
    %12 = arith.addf %4, %11 : vector<2x128xf32>
    %13 = vector.extract_strided_slice %6 {offsets = [0, 1], sizes = [2, 1], strides = [1, 1]} : vector<2x2xf32> to vector<2x1xf32>
    %14 = vector.extract_strided_slice %0 {offsets = [1, 0], sizes = [1, 128], strides = [1, 1]} : vector<2x128xf32> to vector<1x128xf32>
    %15 = vector.broadcast %13 : vector<2x1xf32> to vector<2x128xf32>
    %16 = vector.broadcast %14 : vector<1x128xf32> to vector<2x128xf32>
    %17 = arith.mulf %15, %16 : vector<2x128xf32>
    %18 = arith.addf %12, %17 : vector<2x128xf32>
    %c0_8 = arith.constant 0 : index
    %c1 = arith.constant 1 : index
    %c0_9 = arith.constant 0 : index
    %19 = vector.load %arg0[%c0_8, %c1, %c0_9] : memref<2x8x2xf32, #tpu.memory_space<vmem>>, vector<2x1x2xf32>
    %20 = vector.shape_cast %19 : vector<2x1x2xf32> to vector<2x2xf32>
    %21 = vector.extract_strided_slice %20 {offsets = [0, 0], sizes = [2, 1], strides = [1, 1]} : vector<2x2xf32> to vector<2x1xf32>
    %22 = vector.extract_strided_slice %0 {offsets = [0, 0], sizes = [1, 128], strides = [1, 1]} : vector<2x128xf32> to vector<1x128xf32>
    %23 = vector.broadcast %21 : vector<2x1xf32> to vector<2x128xf32>
    %24 = vector.broadcast %22 : vector<1x128xf32> to vector<2x128xf32>
    %25 = arith.mulf %23, %24 : vector<2x128xf32>
    %26 = arith.addf %4, %25 : vector<2x128xf32>
    %27 = vector.extract_strided_slice %20 {offsets = [0, 1], sizes = [2, 1], strides = [1, 1]} : vector<2x2xf32> to vector<2x1xf32>
    %28 = vector.extract_strided_slice %0 {offsets = [1, 0], sizes = [1, 128], strides = [1, 1]} : vector<2x128xf32> to vector<1x128xf32>
    %29 = vector.broadcast %27 : vector<2x1xf32> to vector<2x128xf32>
    %30 = vector.broadcast %28 : vector<1x128xf32> to vector<2x128xf32>
    %31 = arith.mulf %29, %30 : vector<2x128xf32>
    %32 = arith.addf %26, %31 : vector<2x128xf32>
    %c0_10 = arith.constant 0 : index
    %c2 = arith.constant 2 : index
    %c0_11 = arith.constant 0 : index
    %33 = vector.load %arg0[%c0_10, %c2, %c0_11] : memref<2x8x2xf32, #tpu.memory_space<vmem>>, vector<2x1x2xf32>
    %34 = vector.shape_cast %33 : vector<2x1x2xf32> to vector<2x2xf32>
    %35 = vector.extract_strided_slice %34 {offsets = [0, 0], sizes = [2, 1], strides = [1, 1]} : vector<2x2xf32> to vector<2x1xf32>
    %36 = vector.extract_strided_slice %0 {offsets = [0, 0], sizes = [1, 128], strides = [1, 1]} : vector<2x128xf32> to vector<1x128xf32>
    %37 = vector.broadcast %35 : vector<2x1xf32> to vector<2x128xf32>
    %38 = vector.broadcast %36 : vector<1x128xf32> to vector<2x128xf32>
    %39 = arith.mulf %37, %38 : vector<2x128xf32>
    %40 = arith.addf %4, %39 : vector<2x128xf32>
    %41 = vector.extract_strided_slice %34 {offsets = [0, 1], sizes = [2, 1], strides = [1, 1]} : vector<2x2xf32> to vector<2x1xf32>
    %42 = vector.extract_strided_slice %0 {offsets = [1, 0], sizes = [1, 128], strides = [1, 1]} : vector<2x128xf32> to vector<1x128xf32>
    %43 = vector.broadcast %41 : vector<2x1xf32> to vector<2x128xf32>
    %44 = vector.broadcast %42 : vector<1x128xf32> to vector<2x128xf32>
    %45 = arith.mulf %43, %44 : vector<2x128xf32>
    %46 = arith.addf %40, %45 : vector<2x128xf32>
    %c0_12 = arith.constant 0 : index
    %c3 = arith.constant 3 : index
    %c0_13 = arith.constant 0 : index
    %47 = vector.load %arg0[%c0_12, %c3, %c0_13] : memref<2x8x2xf32, #tpu.memory_space<vmem>>, vector<2x1x2xf32>
    %48 = vector.shape_cast %47 : vector<2x1x2xf32> to vector<2x2xf32>
    %49 = vector.extract_strided_slice %48 {offsets = [0, 0], sizes = [2, 1], strides = [1, 1]} : vector<2x2xf32> to vector<2x1xf32>
    %50 = vector.extract_strided_slice %0 {offsets = [0, 0], sizes = [1, 128], strides = [1, 1]} : vector<2x128xf32> to vector<1x128xf32>
    %51 = vector.broadcast %49 : vector<2x1xf32> to vector<2x128xf32>
    %52 = vector.broadcast %50 : vector<1x128xf32> to vector<2x128xf32>
    %53 = arith.mulf %51, %52 : vector<2x128xf32>
    %54 = arith.addf %4, %53 : vector<2x128xf32>
    %55 = vector.extract_strided_slice %48 {offsets = [0, 1], sizes = [2, 1], strides = [1, 1]} : vector<2x2xf32> to vector<2x1xf32>
    %56 = vector.extract_strided_slice %0 {offsets = [1, 0], sizes = [1, 128], strides = [1, 1]} : vector<2x128xf32> to vector<1x128xf32>
    %57 = vector.broadcast %55 : vector<2x1xf32> to vector<2x128xf32>
    %58 = vector.broadcast %56 : vector<1x128xf32> to vector<2x128xf32>
    %59 = arith.mulf %57, %58 : vector<2x128xf32>
    %60 = arith.addf %54, %59 : vector<2x128xf32>
    %c0_14 = arith.constant 0 : index
    %c4 = arith.constant 4 : index
    %c0_15 = arith.constant 0 : index
    %61 = vector.load %arg0[%c0_14, %c4, %c0_15] : memref<2x8x2xf32, #tpu.memory_space<vmem>>, vector<2x1x2xf32>
    %62 = vector.shape_cast %61 : vector<2x1x2xf32> to vector<2x2xf32>
    %63 = vector.extract_strided_slice %62 {offsets = [0, 0], sizes = [2, 1], strides = [1, 1]} : vector<2x2xf32> to vector<2x1xf32>
    %64 = vector.extract_strided_slice %0 {offsets = [0, 0], sizes = [1, 128], strides = [1, 1]} : vector<2x128xf32> to vector<1x128xf32>
    %65 = vector.broadcast %63 : vector<2x1xf32> to vector<2x128xf32>
    %66 = vector.broadcast %64 : vector<1x128xf32> to vector<2x128xf32>
    %67 = arith.mulf %65, %66 : vector<2x128xf32>
    %68 = arith.addf %4, %67 : vector<2x128xf32>
    %69 = vector.extract_strided_slice %62 {offsets = [0, 1], sizes = [2, 1], strides = [1, 1]} : vector<2x2xf32> to vector<2x1xf32>
    %70 = vector.extract_strided_slice %0 {offsets = [1, 0], sizes = [1, 128], strides = [1, 1]} : vector<2x128xf32> to vector<1x128xf32>
    %71 = vector.broadcast %69 : vector<2x1xf32> to vector<2x128xf32>
    %72 = vector.broadcast %70 : vector<1x128xf32> to vector<2x128xf32>
    %73 = arith.mulf %71, %72 : vector<2x128xf32>
    %74 = arith.addf %68, %73 : vector<2x128xf32>
    %c0_16 = arith.constant 0 : index
    %c5 = arith.constant 5 : index
    %c0_17 = arith.constant 0 : index
    %75 = vector.load %arg0[%c0_16, %c5, %c0_17] : memref<2x8x2xf32, #tpu.memory_space<vmem>>, vector<2x1x2xf32>
    %76 = vector.shape_cast %75 : vector<2x1x2xf32> to vector<2x2xf32>
    %77 = vector.extract_strided_slice %76 {offsets = [0, 0], sizes = [2, 1], strides = [1, 1]} : vector<2x2xf32> to vector<2x1xf32>
    %78 = vector.extract_strided_slice %0 {offsets = [0, 0], sizes = [1, 128], strides = [1, 1]} : vector<2x128xf32> to vector<1x128xf32>
    %79 = vector.broadcast %77 : vector<2x1xf32> to vector<2x128xf32>
    %80 = vector.broadcast %78 : vector<1x128xf32> to vector<2x128xf32>
    %81 = arith.mulf %79, %80 : vector<2x128xf32>
    %82 = arith.addf %4, %81 : vector<2x128xf32>
    %83 = vector.extract_strided_slice %76 {offsets = [0, 1], sizes = [2, 1], strides = [1, 1]} : vector<2x2xf32> to vector<2x1xf32>
    %84 = vector.extract_strided_slice %0 {offsets = [1, 0], sizes = [1, 128], strides = [1, 1]} : vector<2x128xf32> to vector<1x128xf32>
    %85 = vector.broadcast %83 : vector<2x1xf32> to vector<2x128xf32>
    %86 = vector.broadcast %84 : vector<1x128xf32> to vector<2x128xf32>
    %87 = arith.mulf %85, %86 : vector<2x128xf32>
    %88 = arith.addf %82, %87 : vector<2x128xf32>
    %c0_18 = arith.constant 0 : index
    %c6 = arith.constant 6 : index
    %c0_19 = arith.constant 0 : index
    %89 = vector.load %arg0[%c0_18, %c6, %c0_19] : memref<2x8x2xf32, #tpu.memory_space<vmem>>, vector<2x1x2xf32>
    %90 = vector.shape_cast %89 : vector<2x1x2xf32> to vector<2x2xf32>
    %91 = vector.extract_strided_slice %90 {offsets = [0, 0], sizes = [2, 1], strides = [1, 1]} : vector<2x2xf32> to vector<2x1xf32>
    %92 = vector.extract_strided_slice %0 {offsets = [0, 0], sizes = [1, 128], strides = [1, 1]} : vector<2x128xf32> to vector<1x128xf32>
    %93 = vector.broadcast %91 : vector<2x1xf32> to vector<2x128xf32>
    %94 = vector.broadcast %92 : vector<1x128xf32> to vector<2x128xf32>
    %95 = arith.mulf %93, %94 : vector<2x128xf32>
    %96 = arith.addf %4, %95 : vector<2x128xf32>
    %97 = vector.extract_strided_slice %90 {offsets = [0, 1], sizes = [2, 1], strides = [1, 1]} : vector<2x2xf32> to vector<2x1xf32>
    %98 = vector.extract_strided_slice %0 {offsets = [1, 0], sizes = [1, 128], strides = [1, 1]} : vector<2x128xf32> to vector<1x128xf32>
    %99 = vector.broadcast %97 : vector<2x1xf32> to vector<2x128xf32>
    %100 = vector.broadcast %98 : vector<1x128xf32> to vector<2x128xf32>
    %101 = arith.mulf %99, %100 : vector<2x128xf32>
    %102 = arith.addf %96, %101 : vector<2x128xf32>
    %c0_20 = arith.constant 0 : index
    %c7 = arith.constant 7 : index
    %c0_21 = arith.constant 0 : index
    %103 = vector.load %arg0[%c0_20, %c7, %c0_21] : memref<2x8x2xf32, #tpu.memory_space<vmem>>, vector<2x1x2xf32>
    %104 = vector.shape_cast %103 : vector<2x1x2xf32> to vector<2x2xf32>
    %105 = vector.extract_strided_slice %104 {offsets = [0, 0], sizes = [2, 1], strides = [1, 1]} : vector<2x2xf32> to vector<2x1xf32>
    %106 = vector.extract_strided_slice %0 {offsets = [0, 0], sizes = [1, 128], strides = [1, 1]} : vector<2x128xf32> to vector<1x128xf32>
    %107 = vector.broadcast %105 : vector<2x1xf32> to vector<2x128xf32>
    %108 = vector.broadcast %106 : vector<1x128xf32> to vector<2x128xf32>
    %109 = arith.mulf %107, %108 : vector<2x128xf32>
    %110 = arith.addf %4, %109 : vector<2x128xf32>
    %111 = vector.extract_strided_slice %104 {offsets = [0, 1], sizes = [2, 1], strides = [1, 1]} : vector<2x2xf32> to vector<2x1xf32>
    %112 = vector.extract_strided_slice %0 {offsets = [1, 0], sizes = [1, 128], strides = [1, 1]} : vector<2x128xf32> to vector<1x128xf32>
    %113 = vector.broadcast %111 : vector<2x1xf32> to vector<2x128xf32>
    %114 = vector.broadcast %112 : vector<1x128xf32> to vector<2x128xf32>
    %115 = arith.mulf %113, %114 : vector<2x128xf32>
    %116 = arith.addf %110, %115 : vector<2x128xf32>
    %117 = arith.negf %18 : vector<2x128xf32>
    %118 = math.exp %117 : vector<2x128xf32>
    %cst = arith.constant 1.000000e+00 : f32
    %119 = vector.broadcast %cst : f32 to vector<2x128xf32>
    %120 = arith.addf %119, %118 : vector<2x128xf32>
    %121 = arith.divf %119, %120 : vector<2x128xf32>
    %122 = math.tanh %18 : vector<2x128xf32>
    %123 = vector.extract_strided_slice %121 {offsets = [0, 0], sizes = [2, 32], strides = [1, 1]} : vector<2x128xf32> to vector<2x32xf32>
    %124 = vector.extract_strided_slice %121 {offsets = [0, 96], sizes = [2, 32], strides = [1, 1]} : vector<2x128xf32> to vector<2x32xf32>
    %125 = vector.extract_strided_slice %122 {offsets = [0, 64], sizes = [2, 32], strides = [1, 1]} : vector<2x128xf32> to vector<2x32xf32>
    %126 = arith.mulf %123, %125 : vector<2x32xf32>
    %127 = math.tanh %126 : vector<2x32xf32>
    %128 = arith.mulf %124, %127 : vector<2x32xf32>
    %129 = arith.truncf %128 : vector<2x32xf32> to vector<2x32xbf16>
    %cst_22 = arith.constant dense<0.000000e+00> : vector<2x128xf32>
    %130 = tpu.matmul %129, %1, %cst_22 {dimension_numbers = #tpu.dot_dimension_numbers<[1], [0], [0], [1], [0, 0, 1, 1], [], []>} : vector<2x32xbf16>, vector<32x128xbf16>, vector<2x128xf32> -> vector<2x128xf32>
    %131 = arith.addf %32, %130 : vector<2x128xf32>
    %132 = arith.negf %131 : vector<2x128xf32>
    %133 = math.exp %132 : vector<2x128xf32>
    %cst_23 = arith.constant 1.000000e+00 : f32
    %134 = vector.broadcast %cst_23 : f32 to vector<2x128xf32>
    %135 = arith.addf %134, %133 : vector<2x128xf32>
    %136 = arith.divf %134, %135 : vector<2x128xf32>
    %137 = math.tanh %131 : vector<2x128xf32>
    %138 = vector.extract_strided_slice %136 {offsets = [0, 0], sizes = [2, 32], strides = [1, 1]} : vector<2x128xf32> to vector<2x32xf32>
    %139 = vector.extract_strided_slice %136 {offsets = [0, 32], sizes = [2, 32], strides = [1, 1]} : vector<2x128xf32> to vector<2x32xf32>
    %140 = vector.extract_strided_slice %136 {offsets = [0, 96], sizes = [2, 32], strides = [1, 1]} : vector<2x128xf32> to vector<2x32xf32>
    %141 = vector.extract_strided_slice %137 {offsets = [0, 64], sizes = [2, 32], strides = [1, 1]} : vector<2x128xf32> to vector<2x32xf32>
    %142 = arith.mulf %139, %126 : vector<2x32xf32>
    %143 = arith.mulf %138, %141 : vector<2x32xf32>
    %144 = arith.addf %142, %143 : vector<2x32xf32>
    %145 = math.tanh %144 : vector<2x32xf32>
    %146 = arith.mulf %140, %145 : vector<2x32xf32>
    %147 = arith.truncf %146 : vector<2x32xf32> to vector<2x32xbf16>
    %cst_24 = arith.constant dense<0.000000e+00> : vector<2x128xf32>
    %148 = tpu.matmul %147, %1, %cst_24 {dimension_numbers = #tpu.dot_dimension_numbers<[1], [0], [0], [1], [0, 0, 1, 1], [], []>} : vector<2x32xbf16>, vector<32x128xbf16>, vector<2x128xf32> -> vector<2x128xf32>
    %149 = arith.addf %46, %148 : vector<2x128xf32>
    %150 = arith.negf %149 : vector<2x128xf32>
    %151 = math.exp %150 : vector<2x128xf32>
    %cst_25 = arith.constant 1.000000e+00 : f32
    %152 = vector.broadcast %cst_25 : f32 to vector<2x128xf32>
    %153 = arith.addf %152, %151 : vector<2x128xf32>
    %154 = arith.divf %152, %153 : vector<2x128xf32>
    %155 = math.tanh %149 : vector<2x128xf32>
    %156 = vector.extract_strided_slice %154 {offsets = [0, 0], sizes = [2, 32], strides = [1, 1]} : vector<2x128xf32> to vector<2x32xf32>
    %157 = vector.extract_strided_slice %154 {offsets = [0, 32], sizes = [2, 32], strides = [1, 1]} : vector<2x128xf32> to vector<2x32xf32>
    %158 = vector.extract_strided_slice %154 {offsets = [0, 96], sizes = [2, 32], strides = [1, 1]} : vector<2x128xf32> to vector<2x32xf32>
    %159 = vector.extract_strided_slice %155 {offsets = [0, 64], sizes = [2, 32], strides = [1, 1]} : vector<2x128xf32> to vector<2x32xf32>
    %160 = arith.mulf %157, %144 : vector<2x32xf32>
    %161 = arith.mulf %156, %159 : vector<2x32xf32>
    %162 = arith.addf %160, %161 : vector<2x32xf32>
    %163 = math.tanh %162 : vector<2x32xf32>
    %164 = arith.mulf %158, %163 : vector<2x32xf32>
    %165 = arith.truncf %164 : vector<2x32xf32> to vector<2x32xbf16>
    %cst_26 = arith.constant dense<0.000000e+00> : vector<2x128xf32>
    %166 = tpu.matmul %165, %1, %cst_26 {dimension_numbers = #tpu.dot_dimension_numbers<[1], [0], [0], [1], [0, 0, 1, 1], [], []>} : vector<2x32xbf16>, vector<32x128xbf16>, vector<2x128xf32> -> vector<2x128xf32>
    %167 = arith.addf %60, %166 : vector<2x128xf32>
    %168 = arith.negf %167 : vector<2x128xf32>
    %169 = math.exp %168 : vector<2x128xf32>
    %cst_27 = arith.constant 1.000000e+00 : f32
    %170 = vector.broadcast %cst_27 : f32 to vector<2x128xf32>
    %171 = arith.addf %170, %169 : vector<2x128xf32>
    %172 = arith.divf %170, %171 : vector<2x128xf32>
    %173 = math.tanh %167 : vector<2x128xf32>
    %174 = vector.extract_strided_slice %172 {offsets = [0, 0], sizes = [2, 32], strides = [1, 1]} : vector<2x128xf32> to vector<2x32xf32>
    %175 = vector.extract_strided_slice %172 {offsets = [0, 32], sizes = [2, 32], strides = [1, 1]} : vector<2x128xf32> to vector<2x32xf32>
    %176 = vector.extract_strided_slice %172 {offsets = [0, 96], sizes = [2, 32], strides = [1, 1]} : vector<2x128xf32> to vector<2x32xf32>
    %177 = vector.extract_strided_slice %173 {offsets = [0, 64], sizes = [2, 32], strides = [1, 1]} : vector<2x128xf32> to vector<2x32xf32>
    %178 = arith.mulf %175, %162 : vector<2x32xf32>
    %179 = arith.mulf %174, %177 : vector<2x32xf32>
    %180 = arith.addf %178, %179 : vector<2x32xf32>
    %181 = math.tanh %180 : vector<2x32xf32>
    %182 = arith.mulf %176, %181 : vector<2x32xf32>
    %183 = arith.truncf %182 : vector<2x32xf32> to vector<2x32xbf16>
    %cst_28 = arith.constant dense<0.000000e+00> : vector<2x128xf32>
    %184 = tpu.matmul %183, %1, %cst_28 {dimension_numbers = #tpu.dot_dimension_numbers<[1], [0], [0], [1], [0, 0, 1, 1], [], []>} : vector<2x32xbf16>, vector<32x128xbf16>, vector<2x128xf32> -> vector<2x128xf32>
    %185 = arith.addf %74, %184 : vector<2x128xf32>
    %186 = arith.negf %185 : vector<2x128xf32>
    %187 = math.exp %186 : vector<2x128xf32>
    %cst_29 = arith.constant 1.000000e+00 : f32
    %188 = vector.broadcast %cst_29 : f32 to vector<2x128xf32>
    %189 = arith.addf %188, %187 : vector<2x128xf32>
    %190 = arith.divf %188, %189 : vector<2x128xf32>
    %191 = math.tanh %185 : vector<2x128xf32>
    %192 = vector.extract_strided_slice %190 {offsets = [0, 0], sizes = [2, 32], strides = [1, 1]} : vector<2x128xf32> to vector<2x32xf32>
    %193 = vector.extract_strided_slice %190 {offsets = [0, 32], sizes = [2, 32], strides = [1, 1]} : vector<2x128xf32> to vector<2x32xf32>
    %194 = vector.extract_strided_slice %190 {offsets = [0, 96], sizes = [2, 32], strides = [1, 1]} : vector<2x128xf32> to vector<2x32xf32>
    %195 = vector.extract_strided_slice %191 {offsets = [0, 64], sizes = [2, 32], strides = [1, 1]} : vector<2x128xf32> to vector<2x32xf32>
    %196 = arith.mulf %193, %180 : vector<2x32xf32>
    %197 = arith.mulf %192, %195 : vector<2x32xf32>
    %198 = arith.addf %196, %197 : vector<2x32xf32>
    %199 = math.tanh %198 : vector<2x32xf32>
    %200 = arith.mulf %194, %199 : vector<2x32xf32>
    %201 = arith.truncf %200 : vector<2x32xf32> to vector<2x32xbf16>
    %cst_30 = arith.constant dense<0.000000e+00> : vector<2x128xf32>
    %202 = tpu.matmul %201, %1, %cst_30 {dimension_numbers = #tpu.dot_dimension_numbers<[1], [0], [0], [1], [0, 0, 1, 1], [], []>} : vector<2x32xbf16>, vector<32x128xbf16>, vector<2x128xf32> -> vector<2x128xf32>
    %203 = arith.addf %88, %202 : vector<2x128xf32>
    %204 = arith.negf %203 : vector<2x128xf32>
    %205 = math.exp %204 : vector<2x128xf32>
    %cst_31 = arith.constant 1.000000e+00 : f32
    %206 = vector.broadcast %cst_31 : f32 to vector<2x128xf32>
    %207 = arith.addf %206, %205 : vector<2x128xf32>
    %208 = arith.divf %206, %207 : vector<2x128xf32>
    %209 = math.tanh %203 : vector<2x128xf32>
    %210 = vector.extract_strided_slice %208 {offsets = [0, 0], sizes = [2, 32], strides = [1, 1]} : vector<2x128xf32> to vector<2x32xf32>
    %211 = vector.extract_strided_slice %208 {offsets = [0, 32], sizes = [2, 32], strides = [1, 1]} : vector<2x128xf32> to vector<2x32xf32>
    %212 = vector.extract_strided_slice %208 {offsets = [0, 96], sizes = [2, 32], strides = [1, 1]} : vector<2x128xf32> to vector<2x32xf32>
    %213 = vector.extract_strided_slice %209 {offsets = [0, 64], sizes = [2, 32], strides = [1, 1]} : vector<2x128xf32> to vector<2x32xf32>
    %214 = arith.mulf %211, %198 : vector<2x32xf32>
    %215 = arith.mulf %210, %213 : vector<2x32xf32>
    %216 = arith.addf %214, %215 : vector<2x32xf32>
    %217 = math.tanh %216 : vector<2x32xf32>
    %218 = arith.mulf %212, %217 : vector<2x32xf32>
    %219 = arith.truncf %218 : vector<2x32xf32> to vector<2x32xbf16>
    %cst_32 = arith.constant dense<0.000000e+00> : vector<2x128xf32>
    %220 = tpu.matmul %219, %1, %cst_32 {dimension_numbers = #tpu.dot_dimension_numbers<[1], [0], [0], [1], [0, 0, 1, 1], [], []>} : vector<2x32xbf16>, vector<32x128xbf16>, vector<2x128xf32> -> vector<2x128xf32>
    %221 = arith.addf %102, %220 : vector<2x128xf32>
    %222 = arith.negf %221 : vector<2x128xf32>
    %223 = math.exp %222 : vector<2x128xf32>
    %cst_33 = arith.constant 1.000000e+00 : f32
    %224 = vector.broadcast %cst_33 : f32 to vector<2x128xf32>
    %225 = arith.addf %224, %223 : vector<2x128xf32>
    %226 = arith.divf %224, %225 : vector<2x128xf32>
    %227 = math.tanh %221 : vector<2x128xf32>
    %228 = vector.extract_strided_slice %226 {offsets = [0, 0], sizes = [2, 32], strides = [1, 1]} : vector<2x128xf32> to vector<2x32xf32>
    %229 = vector.extract_strided_slice %226 {offsets = [0, 32], sizes = [2, 32], strides = [1, 1]} : vector<2x128xf32> to vector<2x32xf32>
    %230 = vector.extract_strided_slice %226 {offsets = [0, 96], sizes = [2, 32], strides = [1, 1]} : vector<2x128xf32> to vector<2x32xf32>
    %231 = vector.extract_strided_slice %227 {offsets = [0, 64], sizes = [2, 32], strides = [1, 1]} : vector<2x128xf32> to vector<2x32xf32>
    %232 = arith.mulf %229, %216 : vector<2x32xf32>
    %233 = arith.mulf %228, %231 : vector<2x32xf32>
    %234 = arith.addf %232, %233 : vector<2x32xf32>
    %235 = math.tanh %234 : vector<2x32xf32>
    %236 = arith.mulf %230, %235 : vector<2x32xf32>
    %237 = arith.truncf %236 : vector<2x32xf32> to vector<2x32xbf16>
    %cst_34 = arith.constant dense<0.000000e+00> : vector<2x128xf32>
    %238 = tpu.matmul %237, %1, %cst_34 {dimension_numbers = #tpu.dot_dimension_numbers<[1], [0], [0], [1], [0, 0, 1, 1], [], []>} : vector<2x32xbf16>, vector<32x128xbf16>, vector<2x128xf32> -> vector<2x128xf32>
    %239 = arith.addf %116, %238 : vector<2x128xf32>
    %240 = arith.negf %239 : vector<2x128xf32>
    %241 = math.exp %240 : vector<2x128xf32>
    %cst_35 = arith.constant 1.000000e+00 : f32
    %242 = vector.broadcast %cst_35 : f32 to vector<2x128xf32>
    %243 = arith.addf %242, %241 : vector<2x128xf32>
    %244 = arith.divf %242, %243 : vector<2x128xf32>
    %245 = math.tanh %239 : vector<2x128xf32>
    %246 = vector.extract_strided_slice %244 {offsets = [0, 0], sizes = [2, 32], strides = [1, 1]} : vector<2x128xf32> to vector<2x32xf32>
    %247 = vector.extract_strided_slice %244 {offsets = [0, 32], sizes = [2, 32], strides = [1, 1]} : vector<2x128xf32> to vector<2x32xf32>
    %248 = vector.extract_strided_slice %244 {offsets = [0, 96], sizes = [2, 32], strides = [1, 1]} : vector<2x128xf32> to vector<2x32xf32>
    %249 = vector.extract_strided_slice %245 {offsets = [0, 64], sizes = [2, 32], strides = [1, 1]} : vector<2x128xf32> to vector<2x32xf32>
    %250 = arith.mulf %247, %234 : vector<2x32xf32>
    %251 = arith.mulf %246, %249 : vector<2x32xf32>
    %252 = arith.addf %250, %251 : vector<2x32xf32>
    %253 = math.tanh %252 : vector<2x32xf32>
    %254 = arith.mulf %248, %253 : vector<2x32xf32>
    %c0_36 = arith.constant 0 : index
    %c0_37 = arith.constant 0 : index
    %255 = vector.load %arg6[%c0_36, %c0_37] : memref<2x32xf32, #tpu.memory_space<vmem>>, vector<2x32xf32>
    tpu.vector_store %arg6[%c0_36, %c0_37], %254 {strides = array<i32>} : memref<2x32xf32, #tpu.memory_space<vmem>>, vector<2x32xf32>,
    %c0_38 = arith.constant 0 : index
    %c0_39 = arith.constant 0 : index
    %256 = vector.load %arg4[%c0_38, %c0_39] : memref<2x1xf32, #tpu.memory_space<vmem>>, vector<2x1xf32>
    %257 = tpu.concatenate %254, %256 in 1 : vector<2x32xf32>, vector<2x1xf32> -> vector<2x33xf32>
    %c0_40 = arith.constant 0 : index
    %c0_41 = arith.constant 0 : index
    %258 = vector.load %arg5[%c0_40, %c0_41] : memref<2x33xf32, #tpu.memory_space<vmem>>, vector<2x33xf32>
    tpu.vector_store %arg5[%c0_40, %c0_41], %257 {strides = array<i32>} : memref<2x33xf32, #tpu.memory_space<vmem>>, vector<2x33xf32>,
    return
  }
}

</mosaic_0001>

<bundles_post_ra>
// kernel: _feature_extractor_fwd.1
= control target key start
LH: loop header
LB: loop body
LE: loop exit
PB: predicated region body
PF: predicated region fallthrough
CT: control target
= control target key end

     0   :  { %12 = vsyncpa [#allocation3], 0  ;;  %v1156_v1 = vmov 1   ;;  %v1157_v2 = vmov 0   ;;  %s1469_s0 = inlined_call_operand.vmem [shape: f32[2,8,2], index: 0, kind: input, shape index: {}]   ;;  %s1470_s1 = inlined_call_operand.vmem [shape: f32[2,128], index: 1, kind: input, shape index: {}]   ;;  %s1471_s2 = inlined_call_operand.vmem [shape: bf16[32,128], index: 2, kind: input, shape index: {}]   ;;  %s1472_s3 = inlined_call_operand.vmem [shape: f32[1,128], index: 3, kind: input, shape index: {}]   ;;  %s1473_s4 = inlined_call_operand.vmem [shape: f32[2,1], index: 4, kind: input, shape index: {}]   ;;  %s1474_s5 = inlined_call_operand.hbm [shape: f32[2,33], index: 5, kind: output, shape index: {0}]   ;;  %s1475_s6 = inlined_call_operand.hbm [shape: f32[2,32], index: 6, kind: output, shape index: {1}]  }
   0x1   :  { %v38_v0 = vld [vmem:[%s1469_s0 + $0x8] sm:$0x1]  ;;  %1020 = vset.pattern.permute.xlu1 %v1156_v1  ;;  %1019 = vset.pattern.permute.xlu0 %v1157_v2  ;;  %v37_v3 = vld [vmem:[%s1469_s0] sm:$0x1] }
   0x2   :  { %67 = vperm.xlu1 %1020, %v38_v0   ;;  %46 = vperm.xlu0 %1019, %v38_v0  }
   0x3   :  { %13 = vsyncpa [#allocation5], 0  ;;  %v49_v4 = vlaneseq  ;;  %v25_v8 = vld [vmem:[%s1470_s1] sm:$0x3]  ;;  %vm58_vm0 = vcmask 1041409   ;;  %s1158_s1 = smov 64  }
   0x4   :  { %v1222_v20 = vld [vmem:[%s1472_s3] ss:$0 sm:$0xff]  ;;  %s1159_s3 = smov 96   ;;  %v83_v35 = vld [vmem:[%s1469_s0 + $0x9] sm:$0x1]  ;;  %v1160_v36 = vmov 0.0  }
   0x5   :  { %v50_v5 = vshrl.u32 %v49_v4, 7  ;;  %v1235_v34 = vld [vmem:[%s1471_s2] sm:$0xff]   ;;  %954 = vmatprep.subr.bf16.mxu0 %v1160_v36  ;;  %vm1161_vm1 = vmmov 0   ;;  %v1247_v37 = vld [vmem:[%s1471_s2 + $0x8] sm:$0xff]   ;;  %962 = vmatprep.subr.bf16.mxu1 %v1160_v36  ;;  %s1162_s2 = smov 32   ;;  %vm368_vm2 = vcmask 261120  }
   0x6   :  { %63 = vperm.xlu1 %1020, %v37_v3   ;;  %41 = vperm.xlu0 %1019, %v37_v3   ;;  %v82_v41 = vld [vmem:[%s1469_s0 + $0x1] sm:$0x1]  ;;  %s1163_s13 = smov [#allocation4]   ;;  %s1164_s15 = smov [#allocation2]   ;;  %vm877_vm3 = vcmask 254976   ;;  %vm885_vm4 = vcmask 263168  }
   0x7   :  { %v72_v6 = vsub.s32 1, %v50_v5  ;;  %v51_v7 = vsub.s32 0, %v50_v5  ;;  %958 = vmatprep.mubr.msk.bf16.mxu0 %vm1161_vm1, %v1160_v36  ;;  %955 = vmatpush3.bf16.msra.mxu0 %v1235_v34  ;;  %s903_s14 = sshll.u32 %s1163_s13, 4  ;;  %s893_s16 = sshll.u32 %s1164_s15, 4  ;;  %s904_s14 = int_to_ptr.vmem [resolvable:$true] %s903_s14  ;;  %s1437_s16 = int_to_ptr.vmem [resolvable:$true] %s893_s16 }
   0x8   :  { %956 = vmatprep.subr.bf16.mxu0 %v1160_v36  ;;  %963 = vmatpush3.bf16.msra.mxu1 %v1235_v34  ;;  %p1113_p1 = scmp.lt.s32.totalorder %s904_s14, %s904_s14 }
   0x9   :  { %v1212_v9 = vrot.slane %v25_v8, %v72_v6  ;;  %v1214_v10 = vrot.slane %v25_v8, %v51_v7  ;;  %964 = vmatprep.subr.bf16.mxu1 %v1160_v36  ;;  %966 = vmatprep.mubr.msk.bf16.mxu1 %vm1161_vm1, %v1160_v36 }
   0xa   :  { %1021 = vset.pattern.permute.xlu1 %v1157_v2 }
   0xb   :  { %957 = vmatpush3.bf16.msra.mxu0 %v1247_v37 }
   0xc   :  { %965 = vmatpush3.bf16.msra.mxu1 %v1247_v37  ;;  %970 = vmatprep.subr.bf16.mxu0 %v1160_v36 }
   0xd   :  { %978 = vmatprep.subr.bf16.mxu1 %v1160_v36 }
  0x81   :  { %v68_v11 = vpop.permute.xlu1 %67  ;;  %v47_v12 = vpop.permute.xlu0 %46 }
  0x82   :  { %v75_v13 = vmul.f32 %v1212_v9, %v68_v11  ;;  %v54_v14 = vmul.f32 %v1214_v10, %v47_v12 }
  0x84   :  { %v78_v17 = vrot.slane %v75_v13, 7  ;;  %v57_v18 = vrot.slane %v54_v14, 7  ;;  %v119_v14 = vld [vmem:[%s1469_s0 + $0xa] sm:$0x1] }
  0x85   :  { %v64_v15 = vpop.permute.xlu1 %63  ;;  %v42_v16 = vpop.permute.xlu0 %41 }
  0x86   :  { %v74_v19 = vmul.f32 %v1212_v9, %v64_v15  ;;  %v53_v21 = vmul.f32 %v1214_v10, %v42_v16 }
  0x88   :  { %v59_v22 = vsel %vm58_vm0, %v57_v18, %v53_v21  ;;  %v79_v24 = vsel %vm58_vm0, %v78_v17, %v74_v19  ;;  %v118_v17 = vld [vmem:[%s1469_s0 + $0x2] sm:$0x1] }
  0x89   :  { %v61_v23 = vadd.f32 %v1222_v20, %v59_v22 }
  0x8b   :  { %v81_v25 = vadd.f32 %v79_v24, %v61_v23 }
  0x8d   :  { %1044 = vtanh.f32 %v81_v25  ;;  %v916_v27 = vmul.f32 -1.442695, %v81_v25 }
  0x8f   :  { %1046 = vpow2.f32 %v916_v27 }
  0x97   :  { %v1045_v26 = vpop.eup %1044 }
  0x98   :  { %342 = vrot.lane.b32.xlu0 %v1045_v26, %s1158_s1 }
  0x99   :  { %v1047_v28 = vpop.eup %1046 }
  0x9a   :  { %v337_v29 = vadd.f32 1.0, %v1047_v28 }
  0x9c   :  { %1048 = vrcp.f32 %v337_v29 }
  0xa6   :  { %v1049_v30 = vpop.eup %1048 }
 0x10a   :  { %v343_v31 = vpop.permute.xlu0 %342 }
 0x10b   :  { %v1229_v32 = vmul.f32 %v1049_v30, %v343_v31 }
 0x10d   :  { %1050 = vtanh.f32 %v1229_v32 }
 0x117   :  { %v1051_v33 = vpop.eup %1050 }
 0x118   :  { %348 = vrot.lane.b32.xlu1 %v1051_v33, %s1159_s3 }
 0x11c   :  { %91 = vperm.xlu1 %1021, %v83_v35  }
 0x120   :  { %1022 = vset.pattern.permute.xlu1 %v1156_v1 }
 0x121   :  { %107 = vperm.xlu1 %1022, %v83_v35  }
 0x125   :  { %1024 = vset.pattern.permute.xlu1 %v1157_v2 }
 0x18a   :  { %v349_v38 = vpop.permute.xlu1 %348 }
 0x18b   :  { %v351_v39 = vmul.f32 %v1049_v30, %v349_v38 }
 0x18d   :  { %v352_v40 = vpack.c.bf16 %v351_v39, %v351_v39 }
 0x18f   :  { %354 = vrot.lane.b32.xlu0 %v352_v40, %s1162_s2 }
 0x193   :  { %86 = vperm.xlu0 %1019, %v82_v41  }
 0x197   :  { %1023 = vset.pattern.permute.xlu0 %v1156_v1 }
 0x198   :  { %103 = vperm.xlu0 %1023, %v82_v41  }
 0x19b   :  { %v92_v43 = vpop.permute.xlu1 %91 }
 0x19c   :  { %1025 = vset.pattern.permute.xlu0 %v1157_v2  ;;  %v95_v46 = vmul.f32 %v92_v43, %v1214_v10 }
 0x19e   :  { %v98_v49 = vrot.slane %v95_v46, 7 }
 0x1a0   :  { %v108_v45 = vpop.permute.xlu1 %107 }
 0x1a1   :  { %v111_v47 = vmul.f32 %v108_v45, %v1212_v9 }
 0x1a3   :  { %v114_v51 = vrot.slane %v111_v47, 7 }
 0x201   :  { %v355_v42 = vpop.permute.xlu0 %354 }
 0x202   :  { %959 = vmatmul.mubr.msk.bf16.vlgmr.msra.gmra.mrb[0].mxu0 %vm368_vm2, %v355_v42 }
 0x203   :  { %971 = vmatpush3.bf16.msra.mxu0 %v1235_v34  ;;  %974 = vmatprep.mubr.msk.bf16.mxu0 %vm1161_vm1, %v1160_v36 }
 0x204   :  { %972 = vmatprep.subr.bf16.mxu0 %v1160_v36 }
 0x207   :  { %973 = vmatpush3.bf16.msra.mxu0 %v1247_v37 }
 0x208   :  { %986 = vmatprep.subr.bf16.mxu0 %v1160_v36 }
 0x212   :  { %v87_v44 = vpop.permute.xlu0 %86 }
 0x213   :  { %v94_v50 = vmul.f32 %v87_v44, %v1214_v10 }
 0x215   :  { %v99_v53 = vsel %vm58_vm0, %v98_v49, %v94_v50 }
 0x216   :  { %v101_v55 = vadd.f32 %v1222_v20, %v99_v53 }
 0x217   :  { %v104_v48 = vpop.permute.xlu0 %103 }
 0x218   :  { %v110_v52 = vmul.f32 %v104_v48, %v1212_v9 }
 0x21a   :  { %v115_v54 = vsel %vm58_vm0, %v114_v51, %v110_v52 }
 0x21b   :  { %v117_v56 = vadd.f32 %v115_v54, %v101_v55  ;;  %v155_v54 = vld [vmem:[%s1469_s0 + $0xb] sm:$0x1] }
 0x2d5   :  { %v406_v57 = vpop.f32.mrb[0].mxu0 }
 0x2d6   :  { %v412_v58 = vadd.f32 %v406_v57, %v117_v56  ;;  %v960_v59 = vpop.f32.mrb[1].mxu0 }
 0x2d7   :  { %v409_v60 = vpop.f32.mrb[2].mxu0 }
 0x2d8   :  { %1052 = vtanh.f32 %v412_v58  ;;  %v961_v61 = vpop.f32.mrb[3].mxu0  ;;  %v920_v63 = vmul.f32 -1.442695, %v412_v58  ;;  %v154_v58 = vld [vmem:[%s1469_s0 + $0x3] sm:$0x1] }
 0x2da   :  { %1054 = vpow2.f32 %v920_v63 }
 0x2e2   :  { %v1053_v62 = vpop.eup %1052 }
 0x2e3   :  { %426 = vrot.lane.b32.xlu1 %v1053_v62, %s1158_s1 }
 0x2e4   :  { %v1055_v0 = vpop.eup %1054 }
 0x2e5   :  { %v416_v3 = vadd.f32 1.0, %v1055_v0 }
 0x2e7   :  { %421 = vrot.lane.b32.xlu1 %v1229_v32, %s1162_s2  ;;  %1056 = vrcp.f32 %v416_v3 }
 0x2f1   :  { %v1057_v4 = vpop.eup %1056 }
 0x355   :  { %v427_v5 = vpop.permute.xlu1 %426 }
 0x356   :  { %v429_v6 = vmul.f32 %v1057_v4, %v427_v5 }
 0x358   :  { %431 = vrot.lane.b32.xlu0 %v429_v6, %s1162_s2 }
 0x359   :  { %v422_v7 = vpop.permute.xlu1 %421 }
 0x35a   :  { %v424_v8 = vmul.f32 %v1057_v4, %v422_v7 }
 0x3ca   :  { %v432_v11 = vpop.permute.xlu0 %431 }
 0x3cb   :  { %v434_v12 = vadd.f32 %v432_v11, %v424_v8 }
 0x3cd   :  { %1058 = vtanh.f32 %v434_v12 }
 0x3d7   :  { %v1059_v13 = vpop.eup %1058 }
 0x3d8   :  { %437 = vrot.lane.b32.xlu1 %v1059_v13, %s1158_s1 }
 0x3dc   :  { %127 = vperm.xlu1 %1024, %v119_v14  }
 0x3e0   :  { %1026 = vset.pattern.permute.xlu1 %v1156_v1 }
 0x3e1   :  { %143 = vperm.xlu1 %1026, %v119_v14  }
 0x3e5   :  { %139 = vperm.xlu1 %1026, %v118_v17  }
 0x3e9   :  { %1027 = vset.pattern.permute.xlu1 %v1157_v2 }
 0x44a   :  { %v438_v15 = vpop.permute.xlu1 %437 }
 0x44b   :  { %v440_v16 = vmul.f32 %v1057_v4, %v438_v15 }
 0x44d   :  { %v441_v18 = vpack.c.bf16 %v440_v16, %v440_v16 }
 0x44f   :  { %443 = vrot.lane.b32.xlu0 %v441_v18, %s1162_s2 }
 0x453   :  { %122 = vperm.xlu0 %1025, %v118_v17  }
 0x45b   :  { %v128_v21 = vpop.permute.xlu1 %127 }
 0x45c   :  { %v131_v23 = vmul.f32 %v128_v21, %v1214_v10 }
 0x45e   :  { %v134_v25 = vrot.slane %v131_v23, 7 }
 0x460   :  { %v144_v22 = vpop.permute.xlu1 %143 }
 0x461   :  { %v147_v26 = vmul.f32 %v144_v22, %v1212_v9 }
 0x463   :  { %v150_v29 = vrot.slane %v147_v26, 7 }
 0x464   :  { %v140_v28 = vpop.permute.xlu1 %139 }
 0x465   :  { %v146_v31 = vmul.f32 %v140_v28, %v1212_v9 }
 0x467   :  { %v151_v33 = vsel %vm58_vm0, %v150_v29, %v146_v31  ;;  %v191_v31 = vld [vmem:[%s1469_s0 + $0xc] sm:$0x1] }
 0x4c1   :  { %v444_v19 = vpop.permute.xlu0 %443 }
 0x4c2   :  { %967 = vmatmul.mubr.msk.bf16.vlgmr.msra.gmra.mrb[0].mxu1 %vm368_vm2, %v444_v19 }
 0x4c3   :  { %979 = vmatpush3.bf16.msra.mxu1 %v1235_v34  ;;  %982 = vmatprep.mubr.msk.bf16.mxu1 %vm1161_vm1, %v1160_v36 }
 0x4c4   :  { %980 = vmatprep.subr.bf16.mxu1 %v1160_v36 }
 0x4c7   :  { %981 = vmatpush3.bf16.msra.mxu1 %v1247_v37 }
 0x4c8   :  { %994 = vmatprep.subr.bf16.mxu1 %v1160_v36 }
 0x4d2   :  { %v123_v24 = vpop.permute.xlu0 %122 }
 0x4d3   :  { %v130_v27 = vmul.f32 %v123_v24, %v1214_v10 }
 0x4d5   :  { %v135_v30 = vsel %vm58_vm0, %v134_v25, %v130_v27 }
 0x4d6   :  { %v137_v32 = vadd.f32 %v1222_v20, %v135_v30 }
 0x4d8   :  { %v153_v35 = vadd.f32 %v151_v33, %v137_v32 }
 0x595   :  { %v482_v38 = vpop.f32.mrb[0].mxu1 }
 0x596   :  { %v488_v39 = vadd.f32 %v482_v38, %v153_v35  ;;  %v968_v40 = vpop.f32.mrb[1].mxu1  ;;  %v190_v35 = vld [vmem:[%s1469_s0 + $0x4] sm:$0x1] }
 0x597   :  { %v485_v41 = vpop.f32.mrb[2].mxu1 }
 0x598   :  { %1060 = vtanh.f32 %v488_v39  ;;  %v969_v42 = vpop.f32.mrb[3].mxu1  ;;  %v922_v44 = vmul.f32 -1.442695, %v488_v39 }
 0x59a   :  { %1062 = vpow2.f32 %v922_v44 }
 0x5a2   :  { %v1061_v43 = vpop.eup %1060 }
 0x5a3   :  { %498 = vrot.lane.b32.xlu0 %v1061_v43, %s1158_s1 }
 0x5a4   :  { %v1063_v45 = vpop.eup %1062 }
 0x5a5   :  { %v492_v46 = vadd.f32 1.0, %v1063_v45 }
 0x5a7   :  { %1064 = vrcp.f32 %v492_v46 }
 0x5b1   :  { %v1065_v47 = vpop.eup %1064 }
 0x5b2   :  { %v496_v50 = vmul.f32 %v1065_v47, %v434_v12 }
 0x615   :  { %v499_v48 = vpop.permute.xlu0 %498 }
 0x616   :  { %v501_v49 = vmul.f32 %v1065_v47, %v499_v48 }
 0x618   :  { %503 = vrot.lane.b32.xlu1 %v501_v49, %s1162_s2 }
 0x68a   :  { %v504_v51 = vpop.permute.xlu1 %503 }
 0x68b   :  { %v506_v52 = vadd.f32 %v504_v51, %v496_v50 }
 0x68d   :  { %1066 = vtanh.f32 %v506_v52 }
 0x697   :  { %v1067_v53 = vpop.eup %1066 }
 0x698   :  { %509 = vrot.lane.b32.xlu0 %v1067_v53, %s1158_s1 }
 0x69c   :  { %163 = vperm.xlu0 %1025, %v155_v54  }
 0x6a0   :  { %1028 = vset.pattern.permute.xlu0 %v1156_v1 }
 0x6a1   :  { %179 = vperm.xlu0 %1028, %v155_v54  }
 0x6a5   :  { %1031 = vset.pattern.permute.xlu0 %v1157_v2 }
 0x70a   :  { %v510_v55 = vpop.permute.xlu0 %509 }
 0x70b   :  { %v512_v56 = vmul.f32 %v1065_v47, %v510_v55 }
 0x70d   :  { %v513_v57 = vpack.c.bf16 %v512_v56, %v512_v56 }
 0x70f   :  { %515 = vrot.lane.b32.xlu1 %v513_v57, %s1162_s2 }
 0x713   :  { %158 = vperm.xlu1 %1027, %v154_v58  }
 0x717   :  { %1029 = vset.pattern.permute.xlu1 %v1156_v1 }
 0x718   :  { %175 = vperm.xlu1 %1029, %v154_v58  }
 0x71b   :  { %v164_v60 = vpop.permute.xlu0 %163 }
 0x71c   :  { %1030 = vset.pattern.permute.xlu1 %v1157_v2  ;;  %v167_v63 = vmul.f32 %v164_v60, %v1214_v10 }
 0x71e   :  { %v170_v5 = vrot.slane %v167_v63, 7 }
 0x720   :  { %v180_v62 = vpop.permute.xlu0 %179 }
 0x721   :  { %v183_v0 = vmul.f32 %v180_v62, %v1212_v9 }
 0x723   :  { %v186_v6 = vrot.slane %v183_v0, 7 }
 0x781   :  { %v516_v59 = vpop.permute.xlu1 %515 }
 0x782   :  { %975 = vmatmul.mubr.msk.bf16.vlgmr.msra.gmra.mrb[4].mxu0 %vm368_vm2, %v516_v59 }
 0x783   :  { %987 = vmatpush3.bf16.msra.mxu0 %v1235_v34  ;;  %990 = vmatprep.mubr.msk.bf16.mxu0 %vm1161_vm1, %v1160_v36 }
 0x784   :  { %988 = vmatprep.subr.bf16.mxu0 %v1160_v36 }
 0x787   :  { %989 = vmatpush3.bf16.msra.mxu0 %v1247_v37 }
 0x788   :  { %1002 = vmatprep.subr.bf16.mxu0 %v1160_v36 }
 0x792   :  { %v159_v61 = vpop.permute.xlu1 %158 }
 0x793   :  { %v166_v4 = vmul.f32 %v159_v61, %v1214_v10 }
 0x795   :  { %v171_v8 = vsel %vm58_vm0, %v170_v5, %v166_v4 }
 0x796   :  { %v173_v12 = vadd.f32 %v1222_v20, %v171_v8  ;;  %v227_v8 = vld [vmem:[%s1469_s0 + $0xd] sm:$0x1] }
 0x797   :  { %v176_v3 = vpop.permute.xlu1 %175 }
 0x798   :  { %v182_v7 = vmul.f32 %v176_v3, %v1212_v9 }
 0x79a   :  { %v187_v11 = vsel %vm58_vm0, %v186_v6, %v182_v7 }
 0x79b   :  { %v189_v13 = vadd.f32 %v187_v11, %v173_v12 }
 0x855   :  { %v554_v14 = vpop.f32.mrb[4].mxu0 }
 0x856   :  { %v560_v15 = vadd.f32 %v554_v14, %v189_v13  ;;  %v976_v16 = vpop.f32.mrb[5].mxu0  ;;  %v226_v14 = vld [vmem:[%s1469_s0 + $0x5] sm:$0x1] }
 0x857   :  { %v557_v17 = vpop.f32.mrb[6].mxu0 }
 0x858   :  { %1068 = vtanh.f32 %v560_v15  ;;  %v977_v18 = vpop.f32.mrb[7].mxu0  ;;  %v924_v21 = vmul.f32 -1.442695, %v560_v15 }
 0x85a   :  { %1070 = vpow2.f32 %v924_v21 }
 0x862   :  { %v1069_v19 = vpop.eup %1068 }
 0x863   :  { %570 = vrot.lane.b32.xlu1 %v1069_v19, %s1158_s1 }
 0x864   :  { %v1071_v22 = vpop.eup %1070 }
 0x865   :  { %v564_v23 = vadd.f32 1.0, %v1071_v22 }
 0x867   :  { %1072 = vrcp.f32 %v564_v23 }
 0x871   :  { %v1073_v24 = vpop.eup %1072 }
 0x872   :  { %v568_v27 = vmul.f32 %v1073_v24, %v506_v52 }
 0x8d5   :  { %v571_v25 = vpop.permute.xlu1 %570 }
 0x8d6   :  { %v573_v26 = vmul.f32 %v1073_v24, %v571_v25 }
 0x8d8   :  { %575 = vrot.lane.b32.xlu0 %v573_v26, %s1162_s2 }
 0x94a   :  { %v576_v28 = vpop.permute.xlu0 %575 }
 0x94b   :  { %v578_v29 = vadd.f32 %v576_v28, %v568_v27 }
 0x94d   :  { %1074 = vtanh.f32 %v578_v29 }
 0x957   :  { %v1075_v30 = vpop.eup %1074 }
 0x958   :  { %581 = vrot.lane.b32.xlu1 %v1075_v30, %s1158_s1 }
 0x95c   :  { %199 = vperm.xlu1 %1030, %v191_v31  }
 0x960   :  { %1032 = vset.pattern.permute.xlu1 %v1156_v1 }
 0x961   :  { %215 = vperm.xlu1 %1032, %v191_v31  }
 0x965   :  { %211 = vperm.xlu1 %1032, %v190_v35  }
 0x969   :  { %1033 = vset.pattern.permute.xlu1 %v1157_v2 }
 0x9ca   :  { %v582_v32 = vpop.permute.xlu1 %581 }
 0x9cb   :  { %v584_v33 = vmul.f32 %v1073_v24, %v582_v32 }
 0x9cd   :  { %v585_v38 = vpack.c.bf16 %v584_v33, %v584_v33 }
 0x9cf   :  { %587 = vrot.lane.b32.xlu0 %v585_v38, %s1162_s2 }
 0x9d3   :  { %194 = vperm.xlu0 %1031, %v190_v35  }
 0x9db   :  { %v200_v40 = vpop.permute.xlu1 %199 }
 0x9dc   :  { %v203_v42 = vmul.f32 %v200_v40, %v1214_v10 }
 0x9de   :  { %v206_v44 = vrot.slane %v203_v42, 7 }
 0x9e0   :  { %v216_v41 = vpop.permute.xlu1 %215 }
 0x9e1   :  { %v219_v45 = vmul.f32 %v216_v41, %v1212_v9 }
 0x9e3   :  { %v222_v48 = vrot.slane %v219_v45, 7 }
 0x9e4   :  { %v212_v47 = vpop.permute.xlu1 %211 }
 0x9e5   :  { %v218_v50 = vmul.f32 %v212_v47, %v1212_v9  ;;  %v263_v47 = vld [vmem:[%s1469_s0 + $0xe] sm:$0x1] }
 0x9e7   :  { %v223_v52 = vsel %vm58_vm0, %v222_v48, %v218_v50  ;;  %v262_v50 = vld [vmem:[%s1469_s0 + $0x6] sm:$0x1] }
 0xa41   :  { %v588_v39 = vpop.permute.xlu0 %587 }
 0xa42   :  { %983 = vmatmul.mubr.msk.bf16.vlgmr.msra.gmra.mrb[4].mxu1 %vm368_vm2, %v588_v39 }
 0xa43   :  { %995 = vmatpush3.bf16.msra.mxu1 %v1235_v34  ;;  %998 = vmatprep.mubr.msk.bf16.mxu1 %vm1161_vm1, %v1160_v36 }
 0xa44   :  { %996 = vmatprep.subr.bf16.mxu1 %v1160_v36 }
 0xa47   :  { %997 = vmatpush3.bf16.msra.mxu1 %v1247_v37 }
 0xa52   :  { %v195_v43 = vpop.permute.xlu0 %194 }
 0xa53   :  { %v202_v46 = vmul.f32 %v195_v43, %v1214_v10 }
 0xa55   :  { %v207_v49 = vsel %vm58_vm0, %v206_v44, %v202_v46 }
 0xa56   :  { %v209_v51 = vadd.f32 %v1222_v20, %v207_v49 }
 0xa58   :  { %v225_v53 = vadd.f32 %v223_v52, %v209_v51 }
 0xb15   :  { %v626_v54 = vpop.f32.mrb[4].mxu1 }
 0xb16   :  { %v632_v55 = vadd.f32 %v626_v54, %v225_v53  ;;  %v984_v56 = vpop.f32.mrb[5].mxu1 }
 0xb17   :  { %v629_v57 = vpop.f32.mrb[6].mxu1 }
 0xb18   :  { %1076 = vtanh.f32 %v632_v55  ;;  %v985_v58 = vpop.f32.mrb[7].mxu1  ;;  %v926_v60 = vmul.f32 -1.442695, %v632_v55 }
 0xb1a   :  { %1078 = vpow2.f32 %v926_v60 }
 0xb22   :  { %v1077_v59 = vpop.eup %1076 }
 0xb23   :  { %642 = vrot.lane.b32.xlu0 %v1077_v59, %s1158_s1 }
 0xb24   :  { %v1079_v61 = vpop.eup %1078 }
 0xb25   :  { %v636_v62 = vadd.f32 1.0, %v1079_v61 }
 0xb27   :  { %1080 = vrcp.f32 %v636_v62 }
 0xb31   :  { %v1081_v63 = vpop.eup %1080 }
 0xb32   :  { %v640_v4 = vmul.f32 %v1081_v63, %v578_v29 }
 0xb95   :  { %v643_v0 = vpop.permute.xlu0 %642 }
 0xb96   :  { %v645_v3 = vmul.f32 %v1081_v63, %v643_v0 }
 0xb98   :  { %647 = vrot.lane.b32.xlu1 %v645_v3, %s1162_s2 }
 0xc0a   :  { %v648_v5 = vpop.permute.xlu1 %647 }
 0xc0b   :  { %v650_v6 = vadd.f32 %v648_v5, %v640_v4 }
 0xc0d   :  { %1082 = vtanh.f32 %v650_v6 }
 0xc17   :  { %v1083_v7 = vpop.eup %1082 }
 0xc18   :  { %653 = vrot.lane.b32.xlu0 %v1083_v7, %s1158_s1 }
 0xc1c   :  { %235 = vperm.xlu0 %1031, %v227_v8  }
 0xc20   :  { %1034 = vset.pattern.permute.xlu0 %v1156_v1 }
 0xc21   :  { %251 = vperm.xlu0 %1034, %v227_v8  }
 0xc25   :  { %1037 = vset.pattern.permute.xlu0 %v1157_v2 }
 0xc8a   :  { %v654_v11 = vpop.permute.xlu0 %653 }
 0xc8b   :  { %v656_v12 = vmul.f32 %v1081_v63, %v654_v11 }
 0xc8d   :  { %v657_v13 = vpack.c.bf16 %v656_v12, %v656_v12 }
 0xc8f   :  { %659 = vrot.lane.b32.xlu1 %v657_v13, %s1162_s2 }
 0xc93   :  { %230 = vperm.xlu1 %1033, %v226_v14  }
 0xc97   :  { %1035 = vset.pattern.permute.xlu1 %v1156_v1 }
 0xc98   :  { %247 = vperm.xlu1 %1035, %v226_v14  }
 0xc9b   :  { %v236_v16 = vpop.permute.xlu0 %235 }
 0xc9c   :  { %1036 = vset.pattern.permute.xlu1 %v1157_v2  ;;  %v239_v19 = vmul.f32 %v236_v16, %v1214_v10 }
 0xc9e   :  { %v242_v24 = vrot.slane %v239_v19, 7 }
 0xca0   :  { %v252_v18 = vpop.permute.xlu0 %251 }
 0xca1   :  { %v255_v21 = vmul.f32 %v252_v18, %v1212_v9 }
 0xca3   :  { %v258_v25 = vrot.slane %v255_v21, 7 }
 0xd01   :  { %v660_v15 = vpop.permute.xlu1 %659 }
 0xd02   :  { %991 = vmatmul.mubr.msk.bf16.vlgmr.msra.gmra.mrb[8].mxu0 %vm368_vm2, %v660_v15 }
 0xd03   :  { %1003 = vmatpush3.bf16.msra.mxu0 %v1235_v34  ;;  %1006 = vmatprep.mubr.msk.bf16.mxu0 %vm1161_vm1, %v1160_v36 }
 0xd04   :  { %1004 = vmatprep.subr.bf16.mxu0 %v1160_v36 }
 0xd07   :  { %1005 = vmatpush3.bf16.msra.mxu0 %v1247_v37 }
 0xd12   :  { %v231_v17 = vpop.permute.xlu1 %230 }
 0xd13   :  { %v238_v23 = vmul.f32 %v231_v17, %v1214_v10 }
 0xd15   :  { %v243_v26 = vsel %vm58_vm0, %v242_v24, %v238_v23  ;;  %v299_v23 = vld [vmem:[%s1469_s0 + $0xf] sm:$0x1] }
 0xd16   :  { %v245_v37 = vadd.f32 %v1222_v20, %v243_v26  ;;  %v298_v26 = vld [vmem:[%s1469_s0 + $0x7] sm:$0x1] }
 0xd17   :  { %v248_v22 = vpop.permute.xlu1 %247 }
 0xd18   :  { %v254_v34 = vmul.f32 %v248_v22, %v1212_v9 }
 0xd1a   :  { %v259_v36 = vsel %vm58_vm0, %v258_v25, %v254_v34 }
 0xd1b   :  { %v261_v27 = vadd.f32 %v259_v36, %v245_v37 }
 0xdd5   :  { %v698_v28 = vpop.f32.mrb[8].mxu0 }
 0xdd6   :  { %v704_v29 = vadd.f32 %v698_v28, %v261_v27  ;;  %v992_v30 = vpop.f32.mrb[9].mxu0 }
 0xdd7   :  { %v701_v31 = vpop.f32.mrb[10].mxu0 }
 0xdd8   :  { %1084 = vtanh.f32 %v704_v29  ;;  %v993_v32 = vpop.f32.mrb[11].mxu0  ;;  %v928_v35 = vmul.f32 -1.442695, %v704_v29 }
 0xdda   :  { %1086 = vpow2.f32 %v928_v35 }
 0xde2   :  { %v1085_v33 = vpop.eup %1084 }
 0xde3   :  { %714 = vrot.lane.b32.xlu1 %v1085_v33, %s1158_s1 }
 0xde4   :  { %v1087_v38 = vpop.eup %1086 }
 0xde5   :  { %v708_v39 = vadd.f32 1.0, %v1087_v38 }
 0xde7   :  { %1088 = vrcp.f32 %v708_v39 }
 0xdf1   :  { %v1089_v40 = vpop.eup %1088 }
 0xdf2   :  { %v712_v43 = vmul.f32 %v1089_v40, %v650_v6 }
 0xe55   :  { %v715_v41 = vpop.permute.xlu1 %714 }
 0xe56   :  { %v717_v42 = vmul.f32 %v1089_v40, %v715_v41 }
 0xe58   :  { %719 = vrot.lane.b32.xlu0 %v717_v42, %s1162_s2 }
 0xeca   :  { %v720_v44 = vpop.permute.xlu0 %719 }
 0xecb   :  { %v722_v45 = vadd.f32 %v720_v44, %v712_v43 }
 0xecd   :  { %1090 = vtanh.f32 %v722_v45 }
 0xed7   :  { %v1091_v46 = vpop.eup %1090 }
 0xed8   :  { %725 = vrot.lane.b32.xlu1 %v1091_v46, %s1158_s1 }
 0xedc   :  { %271 = vperm.xlu1 %1036, %v263_v47  }
 0xee0   :  { %1038 = vset.pattern.permute.xlu1 %v1156_v1 }
 0xee1   :  { %287 = vperm.xlu1 %1038, %v263_v47  }
 0xee5   :  { %283 = vperm.xlu1 %1038, %v262_v50  }
 0xee9   :  { %1039 = vset.pattern.permute.xlu1 %v1157_v2 }
 0xf4a   :  { %v726_v48 = vpop.permute.xlu1 %725 }
 0xf4b   :  { %v728_v49 = vmul.f32 %v1089_v40, %v726_v48 }
 0xf4d   :  { %v729_v51 = vpack.c.bf16 %v728_v49, %v728_v49 }
 0xf4f   :  { %731 = vrot.lane.b32.xlu0 %v729_v51, %s1162_s2 }
 0xf53   :  { %266 = vperm.xlu0 %1037, %v262_v50  }
 0xf5b   :  { %v272_v53 = vpop.permute.xlu1 %271 }
 0xf5c   :  { %v275_v55 = vmul.f32 %v272_v53, %v1214_v10 }
 0xf5e   :  { %v278_v57 = vrot.slane %v275_v55, 7  ;;  %v879_v55 = vld [vmem:[%s1473_s4] sm:$0x3]  ;;  %s1108_s4 = scalar_lea.vmem %s904_s14, 32 }
 0xf5f   :  { %p1109_p0 = scmp.ne.s32.totalorder %s904_s14, %s1108_s4  ;;  %p1114_p2 = scmp.lt.s32.totalorder %s1108_s4, %s1108_s4 }
 0xf60   :  { %v288_v54 = vpop.permute.xlu1 %287 }
 0xf61   :  { %v291_v58 = vmul.f32 %v288_v54, %v1212_v9  ;;  %p1115_p3 = por %p1114_p2, %p1113_p1 }
 0xf63   :  { %v294_v61 = vrot.slane %v291_v58, 7  ;;  %p1116_p4 = pnand %p1115_p3, %p1109_p0 }
 0xf64   :  { %v284_v60 = vpop.permute.xlu1 %283 }
 0xf65   :  { %v290_v2 = vmul.f32 %v284_v60, %v1212_v9 }
 0xf67   :  { %v295_v0 = vsel %vm58_vm0, %v294_v61, %v290_v2 }
 0xfc1   :  { %v732_v52 = vpop.permute.xlu0 %731 }
 0xfc2   :  { %999 = vmatmul.mubr.msk.bf16.vlgmr.msra.gmra.mrb[8].mxu1 %vm368_vm2, %v732_v52 }
 0xfd2   :  { %v267_v56 = vpop.permute.xlu0 %266 }
 0xfd3   :  { %v274_v59 = vmul.f32 %v267_v56, %v1214_v10 }
 0xfd5   :  { %v279_v62 = vsel %vm58_vm0, %v278_v57, %v274_v59 }
 0xfd6   :  { %v281_v63 = vadd.f32 %v1222_v20, %v279_v62 }
 0xfd8   :  { %v297_v3 = vadd.f32 %v295_v0, %v281_v63 }
0x1095   :  { %v770_v4 = vpop.f32.mrb[8].mxu1 }
0x1096   :  { %v776_v5 = vadd.f32 %v770_v4, %v297_v3  ;;  %v1000_v6 = vpop.f32.mrb[9].mxu1 }
0x1097   :  { %v773_v7 = vpop.f32.mrb[10].mxu1 }
0x1098   :  { %1092 = vtanh.f32 %v776_v5  ;;  %v1001_v8 = vpop.f32.mrb[11].mxu1  ;;  %v930_v12 = vmul.f32 -1.442695, %v776_v5 }
0x109a   :  { %1094 = vpow2.f32 %v930_v12 }
0x10a2   :  { %v1093_v11 = vpop.eup %1092 }
0x10a3   :  { %786 = vrot.lane.b32.xlu0 %v1093_v11, %s1158_s1 }
0x10a4   :  { %v1095_v13 = vpop.eup %1094 }
0x10a5   :  { %v780_v14 = vadd.f32 1.0, %v1095_v13 }
0x10a7   :  { %1096 = vrcp.f32 %v780_v14 }
0x10b1   :  { %v1097_v15 = vpop.eup %1096 }
0x10b2   :  { %v784_v18 = vmul.f32 %v1097_v15, %v722_v45 }
0x1115   :  { %v787_v16 = vpop.permute.xlu0 %786 }
0x1116   :  { %v789_v17 = vmul.f32 %v1097_v15, %v787_v16 }
0x1118   :  { %791 = vrot.lane.b32.xlu1 %v789_v17, %s1162_s2 }
0x118a   :  { %v792_v19 = vpop.permute.xlu1 %791 }
0x118b   :  { %v794_v21 = vadd.f32 %v792_v19, %v784_v18 }
0x118d   :  { %1098 = vtanh.f32 %v794_v21 }
0x1197   :  { %v1099_v22 = vpop.eup %1098 }
0x1198   :  { %797 = vrot.lane.b32.xlu0 %v1099_v22, %s1158_s1 }
0x119c   :  { %307 = vperm.xlu0 %1037, %v299_v23  }
0x11a0   :  { %1040 = vset.pattern.permute.xlu0 %v1156_v1 }
0x11a1   :  { %323 = vperm.xlu0 %1040, %v299_v23  }
0x120a   :  { %v798_v24 = vpop.permute.xlu0 %797 }
0x120b   :  { %v800_v25 = vmul.f32 %v1097_v15, %v798_v24 }
0x120d   :  { %v801_v34 = vpack.c.bf16 %v800_v25, %v800_v25 }
0x120f   :  { %803 = vrot.lane.b32.xlu1 %v801_v34, %s1162_s2 }
0x1213   :  { %302 = vperm.xlu1 %1039, %v298_v26  }
0x1217   :  { %1041 = vset.pattern.permute.xlu1 %v1156_v1 }
0x1218   :  { %319 = vperm.xlu1 %1041, %v298_v26  }
0x121b   :  { %v308_v37 = vpop.permute.xlu0 %307 }
0x121c   :  { %v311_v29 = vmul.f32 %v308_v37, %v1214_v10 }
0x121e   :  { %v314_v33 = vrot.slane %v311_v29, 7 }
0x1220   :  { %v324_v28 = vpop.permute.xlu0 %323 }
0x1221   :  { %v327_v30 = vmul.f32 %v324_v28, %v1212_v9 }
0x1223   :  { %v330_v35 = vrot.slane %v327_v30, 7 }
0x1281   :  { %v804_v36 = vpop.permute.xlu1 %803 }
0x1282   :  { %1007 = vmatmul.mubr.msk.bf16.vlgmr.msra.gmra.mrb[12].mxu0 %vm368_vm2, %v804_v36 }
0x1292   :  { %v303_v27 = vpop.permute.xlu1 %302 }
0x1293   :  { %v310_v32 = vmul.f32 %v303_v27, %v1214_v10 }
0x1295   :  { %v315_v1 = vsel %vm58_vm0, %v314_v33, %v310_v32 }
0x1296   :  { %v317_v40 = vadd.f32 %v1222_v20, %v315_v1 }
0x1297   :  { %v320_v31 = vpop.permute.xlu1 %319 }
0x1298   :  { %v326_v38 = vmul.f32 %v320_v31, %v1212_v9 }
0x129a   :  { %v331_v39 = vsel %vm58_vm0, %v330_v35, %v326_v38 }
0x129b   :  { %v333_v41 = vadd.f32 %v331_v39, %v317_v40 }
0x1355   :  { %v842_v42 = vpop.f32.mrb[12].mxu0 }
0x1356   :  { %v848_v43 = vadd.f32 %v842_v42, %v333_v41  ;;  %v1008_v44 = vpop.f32.mrb[13].mxu0 }
0x1357   :  { %v845_v45 = vpop.f32.mrb[14].mxu0 }
0x1358   :  { %1100 = vtanh.f32 %v848_v43  ;;  %v1009_v46 = vpop.f32.mrb[15].mxu0  ;;  %v932_v10 = vmul.f32 -1.442695, %v848_v43 }
0x135a   :  { %1102 = vpow2.f32 %v932_v10 }
0x1362   :  { %v1101_v47 = vpop.eup %1100 }
0x1363   :  { %858 = vrot.lane.b32.xlu1 %v1101_v47, %s1158_s1 }
0x1364   :  { %v1103_v48 = vpop.eup %1102 }
0x1365   :  { %v852_v9 = vadd.f32 1.0, %v1103_v48 }
0x1367   :  { %1104 = vrcp.f32 %v852_v9 }
0x1371   :  { %v1105_v49 = vpop.eup %1104 }
0x1372   :  { %v856_v20 = vmul.f32 %v1105_v49, %v794_v21 }
0x13d5   :  { %v859_v50 = vpop.permute.xlu1 %858 }
0x13d6   :  { %v861_v51 = vmul.f32 %v1105_v49, %v859_v50 }
0x13d8   :  { %863 = vrot.lane.b32.xlu0 %v861_v51, %s1162_s2 }
0x144a   :  { %v864_v52 = vpop.permute.xlu0 %863 }
0x144b   :  { %v866_v53 = vadd.f32 %v864_v52, %v856_v20 }
0x144d   :  { %1106 = vtanh.f32 %v866_v53 }
0x1457   :  { %v1107_v54 = vpop.eup %1106 }
0x1458   :  { %869 = vrot.lane.b32.xlu1 %v1107_v54, %s1158_s1 }
0x145c   :  { %881 = vrot.lane.b32.xlu1 %v879_v55, %s1162_s2 }
0x14ca   :  { %v870_v56 = vpop.permute.xlu1 %869 }
0x14cb   :  { %v872_v57 = vmul.f32 %v1105_v49, %v870_v56 }
0x14cd   :  { %874 = vrot.lane.b32.xlu0 %v872_v57, %s1162_s2 }
0x14ce   :  { %v882_v58 = vpop.permute.xlu1 %881 }
0x153f   :  { %v875_v59 = vpop.permute.xlu0 %874 }
0x1540   :  { %878 = vst.msk [vmem:[#allocation4] sm:$0x3] %vm877_vm3, %v875_v59  ;;  %v884_v60 = vsel %vm368_vm2, %v875_v59, %v882_v58 }
0x1541   :  { %886 = vst.msk [vmem:[#allocation2] sm:$0x3] %vm885_vm4, %v884_v60 }
0x1542   :  { %1119 = shalt.err (!%p1116_p4)
}
0x1543   :  { %s1120_s17 = scalar_lea.hbm %s1475_s6, 32 }
0x1544   :  { %p1121_p5 = scmp.ne.s32.totalorder %s1475_s6, %s1120_s17  ;;  %p1124_p6 = scmp.lt.u32.totalorder %s1120_s17, %s1475_s6 }
0x1546   :  { %p1126_p7 = pnand %p1124_p6, %p1121_p5 }
0x1548   :  { %1129 = shalt.err (!%p1126_p7)
}
0x1549   :  { %906 = dma.vmem_to_hbm [thread:$0]  %s904_s14, 32, %s1475_s6, [#allocation5]  }
0x154a   :  { %s1130_s24 = scalar_lea.vmem %s1437_s16, 32  ;;  %p1135_p9 = scmp.lt.s32.totalorder %s1437_s16, %s1437_s16 }
0x154b   :  { %p1131_p8 = scmp.ne.s32.totalorder %s1437_s16, %s1130_s24  ;;  %p1136_p10 = scmp.lt.s32.totalorder %s1130_s24, %s1130_s24 }
0x154d   :  { %p1137_p11 = por %p1136_p10, %p1135_p9 }
0x154f   :  { %p1138_p12 = pnand %p1137_p11, %p1131_p8 }
0x1551   :  { %1141 = shalt.err (!%p1138_p12)
}
0x1552   :  { %s1142_s27 = scalar_lea.hbm %s1474_s5, 32 }
0x1553   :  { %p1143_p13 = scmp.ne.s32.totalorder %s1474_s5, %s1142_s27  ;;  %p1146_p0 = scmp.lt.u32.totalorder %s1142_s27, %s1474_s5 }
0x1555   :  { %p1148_p1 = pnand %p1146_p0, %p1143_p13 }
0x1557   :  { %1151 = shalt.err (!%p1148_p1)
}
0x1558   :  { %896 = dma.vmem_to_hbm [thread:$0]  %s1437_s16, 32, %s1474_s5, [#allocation3]  }
0x1559   :  { %1152 = dma.done.wait [#allocation3], 32  }
0x155a   :  { %1153 = vsyncadd [#allocation3], 4294967264 }
0x155b   :  { %1154 = dma.done.wait [#allocation5], 32  }
0x155c   :  { %1155 = vsyncadd [#allocation5], 4294967264 }
0x155d   :  { %913 = vsyncpa [#allocation3], 1 }
0x155e   :  { %914 = vsyncpa [#allocation5], 1 }

</bundles_post_ra>
